<compile_context>
chip_gen: v7x
topology: tpu7x:2x2x1
jax: 0.10.0
libtpu: 0.0.40
codegen_flags: <defaults>
</compile_context>

<pallas_src>
import numpy as np
import jax
import jax.numpy as jnp
from jax.experimental import pallas as pl
from jax.experimental.pallas import tpu as pltpu


def _fgnn_kernel(x_ref, mm_ref, rid_ref, s_ref, w_ref, o_ref):
    """Fused per-pixel complex matmuls + masked combine, feature-major.

    x_ref  : (2*in, TP)     stacked [xr; xi], pixels on the lane axis
    mm_ref : (2, TP)        row 0 = (mask==0), row 1 = (mask==1)
    rid_ref: (1, TP) int32  ring id per pixel
    s_ref  : (2*out, Rp)    per-ring term (ring-mean @ W1), rows [S_r; S_i], rings padded
    w_ref  : (4*out, 2*in)  stacked weights; columns of W_stack encode [y1r|y1i|y2r|y2i]
    o_ref  : (2*out, TP)    output, rows [out_r; out_i]
    """
    x = x_ref[...]
    w = w_ref[...]

    # One fused MXU matmul replaces the 8 real matmuls: rows = [y1r | y1i | y2r | y2i].
    y = jnp.dot(w, x, preferred_element_type=jnp.float32)              # (4*out, TP)
    o2 = o_ref.shape[0]                                                # 2*out
    y1 = y[:o2, :]                                                     # x @ W1 (re|im)
    y2 = y[o2:, :]                                                     # x @ W2 (re|im)

    mm = mm_ref[...]
    m0 = mm[0:1, :]                                                    # (1, TP)
    m1 = mm[1:2, :]

    # In-kernel ring gather: one-hot(rid) small matmul; avoids (P, out) HBM traffic.
    rid = rid_ref[...]                                                 # (1, TP) int32
    rp = s_ref.shape[1]
    onehot = (jax.lax.broadcasted_iota(jnp.int32, (rp, rid.shape[1]), 0)
              == rid).astype(jnp.float32)                              # (Rp, TP)
    s_g = jnp.dot(s_ref[...], onehot, preferred_element_type=jnp.float32)  # (2*out, TP)

    # out = m0 * 0.5 * (y1 + S) + m1 * (y2 - S)
    o_ref[...] = 0.5 * m0 * y1 + m1 * y2 + (0.5 * m0 - m1) * s_g


def fgnn_forward(input_image, input_mask, output, params,
                 ring_width, max_neigh, w_h, tile_p=None):
    """Pallas implementation of FGNN.forward.

    input_image : complex (w_h, w_h, in_features)
    input_mask  : int     (w_h, w_h)  (binary 0/1)
    output      : unused — every pixel belongs to exactly one non-empty annulus, so the
                  torch code overwrites `output` completely; we return a fresh tensor.
    """
    del output
    in_features, out_features = params['w1_re'].shape
    P = w_h * w_h

    # --- static ring geometry (identical to the torch __init__) --------------------
    xs = np.arange(-w_h / 2, w_h / 2, dtype=np.float64)
    xg, yg = np.meshgrid(xs, xs, indexing='ij')
    r = np.sqrt(np.square(xg) + np.square(yg))
    len_r = int(np.sqrt(np.square(w_h / 2) + np.square(w_h / 2))) + 1
    iter_r = len_r // ring_width + (1 if len_r % ring_width != 0 else 0)
    rid_np = np.floor(r / ring_width).astype(np.int32).reshape(-1)           # (P,)
    counts_np = np.bincount(rid_np, minlength=iter_r).astype(np.float32)     # ring sizes
    rid = jnp.asarray(rid_np)

    # --- glue: split complex, build masks ------------------------------------------
    x = input_image.reshape(P, in_features)
    xr = jnp.real(x).astype(jnp.float32)
    xi = jnp.imag(x).astype(jnp.float32)
    mask = input_mask.reshape(P)
    m0 = (mask == 0).astype(jnp.float32)
    m1 = (mask == 1).astype(jnp.float32)

    # --- glue: per-ring mean of mask0-masked pixels, then @ W1 (tiny: iter_r rows) --
    # torch divides by the FULL ring size (neighbor.shape[0] includes zeroed rows).
    # TODO(synk): the torch N > max_neigh branch subsamples neighbors with
    #             random.sample; only the full-neighborhood (N <= max_neigh) path
    #             is implemented here.
    masked = m0[:, None] * jnp.concatenate([xr, xi], axis=1)                 # (P, 2*in)
    ring_sum = jax.ops.segment_sum(masked, rid, num_segments=iter_r)         # (R, 2*in)
    ring_mean = ring_sum / jnp.asarray(np.maximum(counts_np, 1.0))[:, None]
    mean_r = ring_mean[:, :in_features]
    mean_i = ring_mean[:, in_features:]
    hi = jax.lax.Precision.HIGHEST
    w1r, w1i = params['w1_re'], params['w1_im']
    w2r, w2i = params['w2_re'], params['w2_im']
    S_r = jnp.matmul(mean_r, w1r, precision=hi) - jnp.matmul(mean_i, w1i, precision=hi)
    S_i = jnp.matmul(mean_r, w1i, precision=hi) + jnp.matmul(mean_i, w1r, precision=hi)
    # (2*out, Rp) ring table; pad rings up to a multiple of 8 (padded cols never selected)
    r_pad = ((iter_r + 7) // 8) * 8
    s_table = jnp.concatenate([S_r, S_i], axis=1).T                          # (2*out, R)
    s_table = jnp.pad(s_table, ((0, 0), (0, r_pad - iter_r)))

    # --- feature-major (lane-dense) operands for the kernel -------------------------
    xs_fm = jnp.concatenate([xr, xi], axis=1).T                              # (2*in, P)
    mm = jnp.stack([m0, m1], axis=0)                                         # (2, P)
    rid_fm = rid.reshape(1, P).astype(jnp.int32)                             # (1, P)
    # single stacked weight:  W_stack^T @ [xr; xi] -> rows [y1r | y1i | y2r | y2i]
    w_top = jnp.concatenate([w1r, w1i, w2r, w2i], axis=1)                    # (in, 4*out)
    w_bot = jnp.concatenate([-w1i, w1r, -w2i, w2r], axis=1)                  # (in, 4*out)
    w_stack_t = jnp.concatenate([w_top, w_bot], axis=0).T                    # (4*out, 2*in)

    # --- tiling: big lane-aligned pixel tiles, >= 2 grid steps (v7x has 2 TCs) ------
    if tile_p is None:
        tile_p = min(max(P // 2, 128), 2048)
        if P % tile_p != 0:
            tile_p = P                 # fall back to one full block
    assert P % tile_p == 0, (P, tile_p)
    grid = (P // tile_p,)

    two_in = 2 * in_features
    four_out = 4 * out_features
    two_out = 2 * out_features

    in_specs = [
        pl.BlockSpec((two_in, tile_p), lambda i: (0, i)),     # x (feature-major)
        pl.BlockSpec((2, tile_p), lambda i: (0, i)),          # masks [m0; m1]
        pl.BlockSpec((1, tile_p), lambda i: (0, i)),          # ring ids
        pl.BlockSpec((two_out, r_pad), lambda i: (0, 0)),     # per-ring S table (tiny)
        pl.BlockSpec((four_out, two_in), lambda i: (0, 0)),   # stacked weights
    ]
    out_spec = pl.BlockSpec((two_out, tile_p), lambda i: (0, i))

    out_fm = pl.pallas_call(
        _fgnn_kernel,
        out_shape=jax.ShapeDtypeStruct((two_out, P), jnp.float32),
        grid=grid,
        in_specs=in_specs,
        out_specs=out_spec,
        compiler_params=pltpu.CompilerParams(
            dimension_semantics=("parallel",),
            vmem_limit_bytes=32 * 1024 * 1024),
    )(xs_fm, mm, rid_fm, s_table, w_stack_t)

    out_r = out_fm[:out_features, :].T                                       # (P, out)
    out_i = out_fm[out_features:, :].T
    # torch casts to complex128; TPU has no f64 -> complex64 (torch math itself was f32).
    out = jax.lax.complex(out_r, out_i)
    return out.reshape(w_h, w_h, out_features)


def _reference_numpy(input_image, input_mask, params, ring_width, w_h):
    """Pure-numpy mirror of the torch forward (full-neighborhood branch)."""
    img = np.asarray(input_image).astype(np.complex128)
    mask = np.asarray(input_mask)
    w1 = np.asarray(params['w1_re']) + 1j * np.asarray(params['w1_im'])
    w2 = np.asarray(params['w2_re']) + 1j * np.asarray(params['w2_im'])
    in_f, out_f = w1.shape
    xs = np.arange(-w_h / 2, w_h / 2, dtype=np.float64)
    xg, yg = np.meshgrid(xs, xs, indexing='ij')
    r = np.sqrt(np.square(xg) + np.square(yg))
    len_r = int(np.sqrt(np.square(w_h / 2) + np.square(w_h / 2))) + 1
    iter_r = len_r // ring_width + (1 if len_r % ring_width != 0 else 0)
    out = np.zeros((w_h, w_h, out_f), dtype=np.complex128)
    for rr in range(iter_r):
        idx = np.where((r >= rr * ring_width) & (r < (rr + 1) * ring_width))
        if idx[0].size == 0:
            continue
        av = img[idx].reshape(-1, in_f)
        m0 = (mask[idx] == 0).astype(np.float64).reshape(-1, 1)
        m1 = (mask[idx] == 1).astype(np.float64).reshape(-1, 1)
        un = av * m0
        co = av * m1
        s = (un @ w1).sum(axis=0, keepdims=True) / un.shape[0]
        o_un = 0.5 * (un @ w1 + s)
        o_co = co @ w2 - s
        out[idx] = m0 * o_un + m1 * o_co
    return out


if __name__ == "__main__":
    key = jax.random.PRNGKey(0)
    w_h = 16
    in_features = 4
    out_features = 8
    ring_width = 2
    max_neigh = 10_000   # large -> the full-neighborhood branch applies to every ring

    ks = jax.random.split(key, 8)
    params = {
        'w1_re': jax.random.normal(ks[0], (in_features, out_features), jnp.float32),
        'w1_im': jax.random.normal(ks[1], (in_features, out_features), jnp.float32),
        'w2_re': jax.random.normal(ks[2], (in_features, out_features), jnp.float32),
        'w2_im': jax.random.normal(ks[3], (in_features, out_features), jnp.float32),
    }

    x_re = jax.random.normal(ks[4], (w_h, w_h, in_features), jnp.float32)
    x_im = jax.random.normal(ks[5], (w_h, w_h, in_features), jnp.float32)
    input_image = jax.lax.complex(x_re, x_im)                       # complex64
    input_mask = (jax.random.uniform(ks[6], (w_h, w_h)) > 0.5).astype(jnp.int32)
    output_init = jnp.zeros((w_h, w_h, out_features), dtype=jnp.complex64)

    out = fgnn_forward(input_image, input_mask, output_init, params,
                       ring_width, max_neigh, w_h)
    jax.block_until_ready(out)

    ref = _reference_numpy(np.asarray(input_image), np.asarray(input_mask),
                           {k: np.asarray(v) for k, v in params.items()},
                           ring_width, w_h)
    np.testing.assert_allclose(np.asarray(out), ref, rtol=5e-2, atol=5e-2)
    print("KERNEL_OK")
</pallas_src>

<mosaic_0001>
module attributes {stable_mosaic.version = 11 : i64} {
  func.func @_fgnn_kernel(%arg0: i32, %arg1: memref<8x128xf32, #tpu.memory_space<vmem>>, %arg2: memref<2x128xf32, #tpu.memory_space<vmem>>, %arg3: memref<1x128xi32, #tpu.memory_space<vmem>>, %arg4: memref<16x8xf32, #tpu.memory_space<vmem>>, %arg5: memref<32x8xf32, #tpu.memory_space<vmem>>, %arg6: memref<16x128xf32, #tpu.memory_space<vmem>>) attributes {dimension_semantics = [#tpu.dimension_semantics<parallel>], iteration_bounds = array<i64: 2>, scalar_prefetch = 0 : i64, scratch_operands = 0 : i64, tpu.core_type = #tpu.core_type<tc>, window_params = [{transform_indices = @transform_0, window_bounds = array<i64: 8, 128>}, {transform_indices = @transform_1, window_bounds = array<i64: 2, 128>}, {transform_indices = @transform_2, window_bounds = array<i64: 1, 128>}, {pipeline_mode = #tpu.pipeline_mode<synchronous>, transform_indices = @transform_3, window_bounds = array<i64: 16, 8>}, {pipeline_mode = #tpu.pipeline_mode<synchronous>, transform_indices = @transform_4, window_bounds = array<i64: 32, 8>}, {transform_indices = @transform_5, window_bounds = array<i64: 16, 128>}]} {
    %c0 = arith.constant 0 : index
    %c0_0 = arith.constant 0 : index
    %0 = vector.load %arg1[%c0, %c0_0] : memref<8x128xf32, #tpu.memory_space<vmem>>, vector<8x128xf32>
    %c0_1 = arith.constant 0 : index
    %c0_2 = arith.constant 0 : index
    %1 = vector.load %arg5[%c0_1, %c0_2] : memref<32x8xf32, #tpu.memory_space<vmem>>, vector<32x8xf32>
    %cst = arith.constant dense<0.000000e+00> : vector<32x128xf32>
    %2 = tpu.matmul %1, %0, %cst {dimension_numbers = #tpu.dot_dimension_numbers<[1], [0], [0], [1], [0, 0, 1, 1], [], []>} : vector<32x8xf32>, vector<8x128xf32>, vector<32x128xf32> -> vector<32x128xf32>
    %3 = vector.extract_strided_slice %2 {offsets = [0, 0], sizes = [16, 128], strides = [1, 1]} : vector<32x128xf32> to vector<16x128xf32>
    %4 = vector.extract_strided_slice %2 {offsets = [16, 0], sizes = [16, 128], strides = [1, 1]} : vector<32x128xf32> to vector<16x128xf32>
    %c0_3 = arith.constant 0 : index
    %c0_4 = arith.constant 0 : index
    %5 = vector.load %arg2[%c0_3, %c0_4] : memref<2x128xf32, #tpu.memory_space<vmem>>, vector<2x128xf32>
    %6 = vector.extract_strided_slice %5 {offsets = [0, 0], sizes = [1, 128], strides = [1, 1]} : vector<2x128xf32> to vector<1x128xf32>
    %7 = vector.extract_strided_slice %5 {offsets = [1, 0], sizes = [1, 128], strides = [1, 1]} : vector<2x128xf32> to vector<1x128xf32>
    %c0_5 = arith.constant 0 : index
    %c0_6 = arith.constant 0 : index
    %8 = vector.load %arg3[%c0_5, %c0_6] : memref<1x128xi32, #tpu.memory_space<vmem>>, vector<1x128xi32>
    %9 = tpu.iota {dimensions = array<i32: 0>} : vector<8x128xi32>
    %10 = vector.broadcast %8 : vector<1x128xi32> to vector<8x128xi32>
    %11 = arith.cmpi eq, %9, %10 : vector<8x128xi32>
    %12 = arith.extui %11 : vector<8x128xi1> to vector<8x128xi32>
    %13 = arith.sitofp %12 : vector<8x128xi32> to vector<8x128xf32>
    %c0_7 = arith.constant 0 : index
    %c0_8 = arith.constant 0 : index
    %14 = vector.load %arg4[%c0_7, %c0_8] : memref<16x8xf32, #tpu.memory_space<vmem>>, vector<16x8xf32>
    %cst_9 = arith.constant dense<0.000000e+00> : vector<16x128xf32>
    %15 = tpu.matmul %14, %13, %cst_9 {dimension_numbers = #tpu.dot_dimension_numbers<[1], [0], [0], [1], [0, 0, 1, 1], [], []>} : vector<16x8xf32>, vector<8x128xf32>, vector<16x128xf32> -> vector<16x128xf32>
    %cst_10 = arith.constant 5.000000e-01 : f32
    %16 = vector.broadcast %cst_10 : f32 to vector<1x128xf32>
    %17 = arith.mulf %16, %6 : vector<1x128xf32>
    %18 = vector.broadcast %17 : vector<1x128xf32> to vector<16x128xf32>
    %19 = arith.mulf %18, %3 : vector<16x128xf32>
    %20 = vector.broadcast %7 : vector<1x128xf32> to vector<16x128xf32>
    %21 = arith.mulf %20, %4 : vector<16x128xf32>
    %22 = arith.addf %19, %21 : vector<16x128xf32>
    %cst_11 = arith.constant 5.000000e-01 : f32
    %23 = vector.broadcast %cst_11 : f32 to vector<1x128xf32>
    %24 = arith.mulf %23, %6 : vector<1x128xf32>
    %25 = arith.subf %24, %7 : vector<1x128xf32>
    %26 = vector.broadcast %25 : vector<1x128xf32> to vector<16x128xf32>
    %27 = arith.mulf %26, %15 : vector<16x128xf32>
    %28 = arith.addf %22, %27 : vector<16x128xf32>
    %c0_12 = arith.constant 0 : index
    %c0_13 = arith.constant 0 : index
    %29 = vector.load %arg6[%c0_12, %c0_13] : memref<16x128xf32, #tpu.memory_space<vmem>>, vector<16x128xf32>
    tpu.vector_store %arg6[%c0_12, %c0_13], %28 {strides = array<i32>} : memref<16x128xf32, #tpu.memory_space<vmem>>, vector<16x128xf32>,
    return
  }
  func.func @transform_0(%arg0: i32) -> (i32, i32) {
    %c0_i32 = arith.constant 0 : i32
    %c0_i32_0 = arith.constant 0 : i32
    return %c0_i32, %arg0 : i32, i32
  }
  func.func @transform_1(%arg0: i32) -> (i32, i32) {
    %c0_i32 = arith.constant 0 : i32
    %c0_i32_0 = arith.constant 0 : i32
    return %c0_i32, %arg0 : i32, i32
  }
  func.func @transform_2(%arg0: i32) -> (i32, i32) {
    %c0_i32 = arith.constant 0 : i32
    %c0_i32_0 = arith.constant 0 : i32
    return %c0_i32, %arg0 : i32, i32
  }
  func.func @transform_3(%arg0: i32) -> (i32, i32) {
    %c0_i32 = arith.constant 0 : i32
    %c0_i32_0 = arith.constant 0 : i32
    %c0_i32_1 = arith.constant 0 : i32
    return %c0_i32, %c0_i32_0 : i32, i32
  }
  func.func @transform_4(%arg0: i32) -> (i32, i32) {
    %c0_i32 = arith.constant 0 : i32
    %c0_i32_0 = arith.constant 0 : i32
    %c0_i32_1 = arith.constant 0 : i32
    return %c0_i32, %c0_i32_0 : i32, i32
  }
  func.func @transform_5(%arg0: i32) -> (i32, i32) {
    %c0_i32 = arith.constant 0 : i32
    %c0_i32_0 = arith.constant 0 : i32
    return %c0_i32, %arg0 : i32, i32
  }
}

</mosaic_0001>

<bundles_post_ra>
// kernel: tpu_custom_call.1
= control target key start
LH: loop header
LB: loop body
LE: loop exit
PB: predicated region body
PF: predicated region fallthrough
CT: control target
= control target key end

     0   :  { %10 = vsyncpa [#allocation3], 0  ;;  %s889_s0 = inlined_call_operand.vmem [shape: f32[8,256], index: 0, kind: input, shape index: {}]   ;;  %s890_s1 = inlined_call_operand.vmem [shape: f32[2,256], index: 1, kind: input, shape index: {}]   ;;  %s891_s2 = inlined_call_operand.vmem [shape: s32[1,256], index: 2, kind: input, shape index: {}]   ;;  %s892_s3 = inlined_call_operand.vmem [shape: f32[16,8], index: 3, kind: input, shape index: {}]   ;;  %s893_s4 = inlined_call_operand.vmem [shape: f32[32,8], index: 4, kind: input, shape index: {}]   ;;  %s894_s5 = inlined_call_operand.hbm [shape: f32[16,256], index: 5, kind: output, shape index: {}]  }
   0x1   :  { %12 = vsyncpa [#allocation3 + $0x1], 0  ;;  %s756_s18 = smov 0   ;;  %s758_s19 = smov 0  }
   0x2   :  { %s760_s20 = smov 0   ;;  %s762_s21 = smov 0  }
   0x3 LB: > { %s777_s22 = sadd.s32 4294967295, %s719_s21   ;;  %s573_s23 = sadd.s32 4294967294, %s719_s21   ;;  %s719_s21 = sphi %s762_s21, %s900_s21   ;;  %s715_s20 = sphi %s760_s20, %s899_s20   ;;  %s711_s19 = sphi %s758_s19, %s898_s19   ;;  %s707_s18 = sphi %s756_s18, %s897_s18  }
   0x4   : > { %s781_s24 = sadd.s32 1, %s719_s21   ;;  %s145_s25 = sadd.s32 1, %s715_s20 }
   0x5   : > { %s142_s26 = ssub.s32 %s719_s21, %s781_s24  ;;  %p155_p0 = scmp.ne.s32.totalorder %s715_s20, %s711_s19 }
   0x6   : > { %p143_p1 = scmp.eq.s32.totalorder %s142_s26, 0  ;;  %p156_p2 = scmp.eq.s32.totalorder %s777_s22, 1 }
   0x7   : > { %p161_p3 = scmp.ne.s32.totalorder %s711_s19, %s707_s18  ;;  %p162_p4 = scmp.eq.s32.totalorder %s573_s23, 1 }
   0x8   : > { %s792_s27 = scalar_select %p143_p1, %s715_s20, %s145_s25  }
   0x9   : > { %p794_p5 = por %p156_p2, %p155_p0  ;;  %p798_p6 = por %p162_p4, %p161_p3 }
   0xa   : > { %p576_p7 = scmp.ge.s32.totalorder %s719_s21, 1  ;;  %p206_p8 = scmp.lt.s32.totalorder %s719_s21, 3 }
   0xc   : > { %p207_p9 = pnand %p576_p7, %p206_p8 }
   0xd   : > { %p240_p10 = scmp.lt.s32.totalorder (!%p207_p9), %s777_s22, 1  ;;  %v252_v0 = vld [vmem:[%s893_s4] sm:$0xff] (!%p207_p9)  ;;  %vm256_vm0 = vcmask (!%p207_p9), 64512   ;;  %v356_v1 = vlaneseq (!%p207_p9)  ;;  %v253_v6 = vld [vmem:[%s893_s4 + $0x8] sm:$0xff] (!%p207_p9)  ;;  %v254_v8 = vld [vmem:[%s893_s4 + $0x10] sm:$0xff] (!%p207_p9)  ;;  %v721_v9 = vmov (!%p207_p9), 1.0  }
   0xe   : > { %210 = sbr.rel (%p207_p9) target bundleno = 267 (0x10b), region = 40  ;;  %603 = vmatprep.mubr.msk.f32.mxu0 (!%p207_p9), %vm256_vm0, %v252_v0  ;;  %v365_v2 = vld [vmem:[%s892_s3] sm:$0xff] (!%p207_p9)  ;;  %v366_v7 = vld [vmem:[%s892_s3 + $0x8] sm:$0xff] (!%p207_p9)  ;;  %v255_v10 = vld [vmem:[%s893_s4 + $0x18] sm:$0xff] (!%p207_p9)  ;;  %s237_s14 = sand.u32 (!%p207_p9), 1, %s711_s19  }
   0xf   : > { %v357_v3 = vshrl.u32 (!%p207_p9), %v356_v1, 7  ;;  %611 = vmatprep.mubr.msk.f32.mxu1 (!%p207_p9), %vm256_vm0, %v365_v2  ;;  %s577_s15 = sshll.u32 (!%p207_p9), %s237_s14, 4  ;;  %s590_s17 = sshll.u32 (!%p207_p9), %s777_s22, 7 }
  0x10   : > { %s846_s26 = scalar_lea.hbm (!%p207_p9), %s894_s5, %s590_s17  ;;  %s848_s30 = scalar_lea.sflag (!%p207_p9), [#allocation3], %s237_s14 }
  0x11   : > { %v451_v14 = vsub.s32 (!%p207_p9), 0, %v357_v3  ;;  %v457_v17 = vsub.s32 (!%p207_p9), 1, %v357_v3 }
  0x15   : > { %s241_s9 = scalar_select %p240_p10, %s777_s22, 1 }
  0x16   : > { %s722_s22 = smov [#allocation2]  }
  0x17   : > { %s578_s10 = sshll.u32 %s241_s9, 3  ;;  %s250_s13 = scalar_lea.vmem %s891_s2, %s241_s9 }
  0x18   : > { %s243_s16 = scalar_lea.vmem %s889_s0, %s578_s10  ;;  %v584_v4 = vld [vmem:[%s250_s13] ss:$0 sm:$0xff]  ;;  %s579_s10 = sshll.u32 %s241_s9, 1 }
  0x19   : > { %v251_v5 = vld [vmem:[%s243_s16] sm:$0xff]  ;;  %vm362_vm1 = vcmp.eq.s32.totalorder %v357_v3, %v584_v4  ;;  %s247_s13 = scalar_lea.vmem %s890_s1, %s579_s10  ;;  %s239_s9 = scalar_lea.vmem [#allocation2], %s577_s15 }
  0x1a   : > { %601 = vmatprep.subr.mxu0 %v251_v5  ;;  %609 = vmatprep.subr.msk.mxu1 %vm362_vm1, %v721_v9  ;;  %v354_v11 = vld [vmem:[%s247_s13] sm:$0x3]  ;;  %s490_s16 = sshll.u32 %s239_s9, 4  ;;  %s661_s7 = sshll.u32 %s722_s22, 4  ;;  %s841_s16 = int_to_ptr.vmem [resolvable:$true] %s490_s16  ;;  %s662_s7 = int_to_ptr.vmem [resolvable:$false] %s661_s7 }
  0x1b   : > { %602 = vmatpush3.msra.mxu0 %v251_v5  ;;  %610 = vmatpush3.msk.msra.mxu1 %vm362_vm1, %v721_v9  ;;  %v464_v12 = vrot.slane %v354_v11, 1  ;;  %v448_v13 = vmul.f32 0.5, %v354_v11  ;;  %v458_v23 = vrot.slane %v354_v11, %v457_v17  ;;  %s657_s6 = scalar_lea.vmem %s841_s16, 256  ;;  %s663_s8 = scalar_lea.vmem %s662_s7, 512 }
  0x1c   : > { %604 = vmatmul.mubr.msk.f32.vlgmr.msra.gmra.mrb[0].mxu0 %vm256_vm0, %v253_v6  ;;  %612 = vmatmul.mubr.msk.f32.vlgmr.msra.gmra.mrb[0].mxu1 %vm256_vm0, %v366_v7  ;;  %p658_p11 = scmp.ne.s32.totalorder %s841_s16, %s657_s6  ;;  %p664_p0 = scmp.lt.s32.totalorder %s841_s16, %s662_s7 }
  0x1d   : > { %606 = vmatprep.mubr.msk.f32.mxu0 %vm256_vm0, %v254_v8  ;;  %v466_v15 = vsub.f32 %v448_v13, %v464_v12  ;;  %v452_v16 = vrot.slane %v448_v13, %v451_v14  ;;  %p665_p1 = scmp.lt.s32.totalorder %s663_s8, %s657_s6 }
  0x1e   : > { %p659_p12 = pnand %p658_p11, %p794_p5 }
  0x1f   : > { %v470_v18 = vrot.slane %v466_v15, %v451_v14  ;;  %p666_p2 = por %p665_p1, %p664_p0 }
  0x20   : > { %607 = vmatmul.mubr.msk.f32.gmra.mrb[2].mxu0 %vm256_vm0, %v255_v10  ;;  %p660_p13 = pneg %p659_p12 }
  0x22   : > { %p667_p3 = pnand %p666_p2, %p660_p13 }
  0xef   : > { %v605_v19 = vpop.f32.mrb[0].mxu0  ;;  %v613_v20 = vpop.f32.mrb[0].mxu1 }
  0xf0   : > { %v454_v21 = vmul.f32 %v605_v19, %v452_v16  ;;  %v335_v22 = vpop.f32.mrb[1].mxu0  ;;  %v472_v24 = vmul.f32 %v613_v20, %v470_v18  ;;  %v439_v25 = vpop.f32.mrb[1].mxu1 }
  0xf1   : > { %v453_v26 = vmul.f32 %v452_v16, %v335_v22  ;;  %v471_v27 = vmul.f32 %v470_v18, %v439_v25 }
  0xf3   : > { %v608_v28 = vpop.f32.mrb[2].mxu0 }
  0xf4   : > { %v460_v29 = vmul.f32 %v608_v28, %v458_v23  ;;  %v345_v30 = vpop.f32.mrb[3].mxu0 }
  0xf5   : > { %v459_v31 = vmul.f32 %v458_v23, %v345_v30 }
  0xf6   : > { %v462_v32 = vadd.f32 %v460_v29, %v454_v21 }
  0xf7   : > { %v461_v33 = vadd.f32 %v459_v31, %v453_v26 }
  0xf8   : > { %v474_v34 = vadd.f32 %v472_v24, %v462_v32 }
  0xf9   : > { %v473_v35 = vadd.f32 %v471_v27, %v461_v33 }
  0xfa   : > { %476 = vst [vmem:[%s239_s9 + $0x8] sm:$0xff] %v474_v34 }
  0xfb   : > { %475 = vst [vmem:[%s239_s9] sm:$0xff] %v473_v35 }
  0xfc   : > { %670 = shalt.err (!%p667_p3)
}
  0xfd   : > { %s671_s10 = scalar_lea.hbm %s846_s26, 256  ;;  %s675_s13 = scalar_lea.hbm %s894_s5, 512 }
  0xfe   : > { %p672_p4 = scmp.ne.s32.totalorder %s846_s26, %s671_s10  ;;  %p676_p9 = scmp.lt.u32.totalorder %s846_s26, %s894_s5 }
  0xff   : > { %p677_p10 = scmp.lt.u32.totalorder %s675_s13, %s671_s10  ;;  %p679_p12 = scmp.lt.u32.totalorder %s671_s10, %s846_s26 }
 0x100   : > { %p673_p7 = pnand %p672_p4, %p794_p5 }
 0x101   : > { %p678_p11 = por %p677_p10, %p676_p9 }
 0x102   : > { %p674_p8 = pneg %p673_p7 }
 0x103   : > { %p680_p13 = por %p679_p12, %p678_p11 }
 0x105   : > { %p681_p0 = pnand %p680_p13, %p674_p8 }
 0x107   : > { %684 = shalt.err (!%p681_p0)
}
 0x108   : > { %s723_s9 = smov 128   ;;  %s724_s17 = smov 256  }
 0x109   : > { %s725_s23 = smov 8  }
 0x10a   : > { %614 = dma.vmem_to_hbm [thread:$0]  (%p794_p5), %s841_s16, 256, %s846_s26, %s848_s30, %s723_s9, %s724_s17, %s725_s23  }
 0x10b PF: > { %p620_p1 = scmp.ge.s32.totalorder %s719_s21, 2  ;;  %s505_s25 = sand.u32 1, %s707_s18  }
 0x10c   : > { %s506_s6 = scalar_lea.sflag [#allocation3], %s505_s25 }
 0x10d   : > { %p617_p2 = pnand %p620_p1, %p798_p6 }
 0x10f   : > { %702 = dma.done.wait (!%p617_p2), %s506_s6, 256  }
 0x110   : > { %704 = vsyncadd (!%p617_p2), %s506_s6, 4294967040  ;;  %p15_p3 = scmp.ge.s32.totalorder %s781_s24, 4   ;;  %s897_s18 = smov %s711_s19 }
 0x111   : > { %s898_s19 = smov %s715_s20  ;;  %s899_s20 = smov %s792_s27 }
 0x112   : > { %s900_s21 = smov %s781_s24  ;;  %17 = sbr.rel (!%p15_p3) target bundleno = 3 (0x3), region = 81 }
 0x119   :  { %511 = vsyncpa [#allocation3], 1 }
 0x11a   :  { %513 = vsyncpa [#allocation3 + $0x1], 1 }

</bundles_post_ra>
